<compile_context>
chip_gen: v5e
topology: v5e:2x2
jax: 0.10.0
libtpu: 0.0.40
codegen_flags: <defaults>
</compile_context>

<pallas_src>
import math

import jax
import jax.numpy as jnp
from jax.experimental import pallas as pl
from jax.experimental.pallas import tpu as pltpu


def _round_up(x, m):
    return ((x + m - 1) // m) * m


_VMEM_SOFT_CAP = 48 * 1024 * 1024     # shrink tiles above this estimate
_VMEM_CAP = 64 * 1024 * 1024          # never request more (safe on v5e/v6e/v7x)


def _padded_tile_bytes(rows, cols, itemsize):
    return _round_up(max(rows, 1), 8) * _round_up(max(cols, 1), 128) * itemsize


def _kv_vmem_bytes(ts, d_llm, HE, cdt):
    cb = jnp.dtype(cdt).itemsize
    t = _padded_tile_bytes
    n = 2 * 2 * t(ts, d_llm, cb)                       # source / value tiles (x2 buf)
    n += 2 * 2 * t(d_llm, HE, cb) + 2 * 2 * t(1, HE, 4)  # Wk, Wv, bk, bv
    n += 2 * 2 * t(ts, HE, cb)                         # K, V output tiles
    n += 2 * t(ts, HE, 4)                              # f32 intermediates
    return n


def _attn_vmem_bytes(tm, d_model, H, E, S_pad, HE, d_out, cdt, out_dtype):
    cb = jnp.dtype(cdt).itemsize
    ob = jnp.dtype(out_dtype).itemsize
    t = _padded_tile_bytes
    n = 2 * t(tm, d_model, cb)                         # target tile
    n += 2 * H * t(E, S_pad, cb)                       # K (H, E, S_pad)
    n += 2 * H * t(S_pad, E, cb)                       # V (H, S_pad, E), lane padded
    n += 2 * t(1, S_pad, 4)                            # score mask
    n += 2 * t(d_model, HE, cb) + 2 * t(1, HE, 4)      # Wq, bq
    n += 2 * t(HE, d_out, cb) + 2 * t(1, d_out, 4)     # Wo, bo
    n += 2 * t(tm, d_out, ob)                          # output tile
    n += t(tm, HE, cb)                                 # o_flat scratch
    # large in-kernel f32 intermediates: q, one head's scores/probs, f32 out
    n += t(tm, HE, 4) + 3 * t(tm, S_pad, 4) + t(tm, d_out, 4)
    return n


# ---------------------------------------------------------------------------
# Kernel 1: batch-invariant K / V projections as full-width GEMMs, tiled over S.
# ---------------------------------------------------------------------------
def _kv_projection_kernel(src_ref, val_ref, wk_ref, bk_ref, wv_ref, bv_ref,
                          k_ref, v_ref):
    k = jnp.dot(src_ref[...], wk_ref[...],
                preferred_element_type=jnp.float32) + bk_ref[...]
    v = jnp.dot(val_ref[...], wv_ref[...],
                preferred_element_type=jnp.float32) + bv_ref[...]
    k_ref[...] = k.astype(k_ref.dtype)
    v_ref[...] = v.astype(v_ref.dtype)


# ---------------------------------------------------------------------------
# Kernel 2: fused Q projection + per-head attention + output projection over one
# tile of tm flattened (B*L) query rows.  No in-kernel relayouts.
# ---------------------------------------------------------------------------
def _make_attention_kernel(H, E, scale):
    def kernel(tgt_ref, k_ref, v_ref, smask_ref, wq_ref, bq_ref, wo_ref, bo_ref,
               out_ref, oflat_ref):
        cdt = k_ref.dtype

        # Q projection: one full-width MXU GEMM (f32 accumulation); the softmax
        # scale is folded into q here (tm*H*E elements) instead of the scores.
        q = (jnp.dot(tgt_ref[...], wq_ref[...],
                     preferred_element_type=jnp.float32) + bq_ref[...]) * scale
        q = q.astype(cdt)                                   # (tm, H*E)

        bias = smask_ref[...]                               # (1, S_pad): 0 / -1e30

        # Heads: short static loop of 2-D MXU dots (same MXU passes a batched
        # dot_general would issue), with no (tm,H*E)<->(H,tm,E) relayouts.
        for h in range(H):
            q_h = q[:, h * E:(h + 1) * E]                   # (tm, E) static slice
            # scores: (tm, E) @ (E, S_pad) -- S lane-dense, native NN matmul.
            s = jnp.dot(q_h, k_ref[h],
                        preferred_element_type=jnp.float32) + bias
            # softmax over S (f32 math; reciprocal on the EUP slot).
            s = s - jnp.max(s, axis=-1, keepdims=True)
            p = jnp.exp(s)
            a = p * pl.reciprocal(jnp.sum(p, axis=-1, keepdims=True), approx=True)
            # A @ V: (tm, S_pad) @ (S_pad, E), contraction over the long S axis.
            o_h = jnp.dot(a.astype(cdt), v_ref[h],
                          preferred_element_type=jnp.float32)
            oflat_ref[:, h * E:(h + 1) * E] = o_h.astype(cdt)

        # Output projection: ONE full-width GEMM into the lane-padded d_llm.
        out = jnp.dot(oflat_ref[...], wo_ref[...],
                      preferred_element_type=jnp.float32) + bo_ref[...]
        out_ref[...] = out.astype(out_ref.dtype)

    return kernel


def state_abstraction_layer(target, source, value, params, n_heads, *,
                            tile_m=256, tile_s=256, compute_dtype=jnp.bfloat16):
    """Pallas-backed forward. target: (B,L,d_model); source/value: (S,d_llm)."""
    wq, bq, wk, bk, wv, bv, wo, bo = params
    B, L, d_model = target.shape
    S, d_llm = source.shape
    HE = wq.shape[1]
    H = n_heads
    E = HE // H
    out_dtype = target.dtype
    cdt = compute_dtype

    # ---------------- K / V projections (hoisted, one full-width GEMM each) ----
    S_pad = _round_up(S, 128)                    # lane-dense scores & K
    src = source.astype(cdt)
    val = value.astype(cdt)
    if S_pad != S:
        src = jnp.pad(src, ((0, S_pad - S), (0, 0)))
        val = jnp.pad(val, ((0, S_pad - S), (0, 0)))

    ts = math.gcd(S_pad, _round_up(min(tile_s, S_pad), 128))
    while ts > 128 and _kv_vmem_bytes(ts, d_llm, HE, cdt) > _VMEM_SOFT_CAP:
        ts //= 2
    kv_vmem = int(min(_VMEM_CAP, max(32 << 20,
                  1.25 * _kv_vmem_bytes(ts, d_llm, HE, cdt) + (4 << 20))))

    kv_grid = pltpu.PrefetchScalarGridSpec(
        num_scalar_prefetch=0,
        grid=(S_pad // ts,),
        in_specs=[
            pl.BlockSpec((ts, d_llm), lambda i: (i, 0)),     # source rows
            pl.BlockSpec((ts, d_llm), lambda i: (i, 0)),     # value rows
            pl.BlockSpec((d_llm, HE), lambda i: (0, 0)),     # Wk
            pl.BlockSpec((1, HE), lambda i: (0, 0)),         # bk
            pl.BlockSpec((d_llm, HE), lambda i: (0, 0)),     # Wv
            pl.BlockSpec((1, HE), lambda i: (0, 0)),         # bv
        ],
        out_specs=(
            pl.BlockSpec((ts, HE), lambda i: (i, 0)),
            pl.BlockSpec((ts, HE), lambda i: (i, 0)),
        ),
    )
    k2d, v2d = pl.pallas_call(
        _kv_projection_kernel,
        out_shape=(jax.ShapeDtypeStruct((S_pad, HE), cdt),
                   jax.ShapeDtypeStruct((S_pad, HE), cdt)),
        grid_spec=kv_grid,
        compiler_params=pltpu.CompilerParams(
            dimension_semantics=("parallel",), vmem_limit_bytes=kv_vmem),
    )(src, val, wk.astype(cdt), bk.astype(jnp.float32),
      wv.astype(cdt), bv.astype(jnp.float32))

    # One-shot relayout to the attention layouts (wrapper / XLA, NOT per tile).
    k_heads = jnp.transpose(k2d.reshape(S_pad, H, E), (1, 2, 0))   # (H, E, S_pad)
    v_heads = jnp.transpose(v2d.reshape(S_pad, H, E), (1, 0, 2))   # (H, S_pad, E)

    # Additive score bias: 0 on valid S columns, -1e30 on the padded columns.
    smask = jnp.where(jnp.arange(S_pad, dtype=jnp.int32)[None, :] < S,
                      0.0, -1e30).astype(jnp.float32)              # (1, S_pad)

    # ---------------- fused Q projection + attention + output projection -------
    M = B * L
    tm = min(_round_up(tile_m, 8), _round_up(M, 8))
    d_out = _round_up(d_llm, 128)                # lane-dense output stores
    while tm > 8 and _attn_vmem_bytes(tm, d_model, H, E, S_pad, HE, d_out,
                                      cdt, out_dtype) > _VMEM_SOFT_CAP:
        tm = max(8, tm // 2)
    M_pad = _round_up(M, tm)
    attn_vmem = int(min(_VMEM_CAP, max(32 << 20,
                    1.25 * _attn_vmem_bytes(tm, d_model, H, E, S_pad, HE, d_out,
                                            cdt, out_dtype) + (4 << 20))))

    tgt = target.reshape(M, d_model).astype(cdt)
    if M_pad != M:
        tgt = jnp.pad(tgt, ((0, M_pad - M), (0, 0)))

    wo_p = wo.astype(cdt)
    bo_p = bo.astype(jnp.float32)
    if d_out != d_llm:
        wo_p = jnp.pad(wo_p, ((0, 0), (0, d_out - d_llm)))
        bo_p = jnp.pad(bo_p, ((0, 0), (0, d_out - d_llm)))

    kernel = _make_attention_kernel(H, E, 1.0 / math.sqrt(E))
    grid_spec = pltpu.PrefetchScalarGridSpec(
        num_scalar_prefetch=0,
        grid=(M_pad // tm,),
        in_specs=[
            pl.BlockSpec((tm, d_model), lambda i: (i, 0)),       # target row tile
            pl.BlockSpec((H, E, S_pad), lambda i: (0, 0, 0)),    # K (grid-constant)
            pl.BlockSpec((H, S_pad, E), lambda i: (0, 0, 0)),    # V (grid-constant)
            pl.BlockSpec((1, S_pad), lambda i: (0, 0)),          # score mask
            pl.BlockSpec((d_model, HE), lambda i: (0, 0)),       # Wq
            pl.BlockSpec((1, HE), lambda i: (0, 0)),             # bq
            pl.BlockSpec((HE, d_out), lambda i: (0, 0)),         # Wo (lane padded)
            pl.BlockSpec((1, d_out), lambda i: (0, 0)),          # bo (lane padded)
        ],
        out_specs=pl.BlockSpec((tm, d_out), lambda i: (i, 0)),
        scratch_shapes=[pltpu.VMEM((tm, HE), cdt)],              # flat head outputs
    )
    out = pl.pallas_call(
        kernel,
        out_shape=jax.ShapeDtypeStruct((M_pad, d_out), out_dtype),
        grid_spec=grid_spec,
        compiler_params=pltpu.CompilerParams(
            dimension_semantics=("parallel",), vmem_limit_bytes=attn_vmem),
    )(tgt, k_heads, v_heads, smask,
      wq.astype(cdt), bq.astype(jnp.float32), wo_p, bo_p)

    return out[:M, :d_llm].reshape(B, L, d_llm)


def reference_forward(target, source, value, params, n_heads):
    """Plain-JAX f32 reference reproducing the PyTorch forward (dropout eval mode)."""
    wq, bq, wk, bk, wv, bv, wo, bo = params
    B, L, _ = target.shape
    S, _ = source.shape
    H = n_heads
    q = (target @ wq + bq).reshape(B, L, H, -1)
    k = (source @ wk + bk).reshape(S, H, -1)
    v = (value @ wv + bv).reshape(S, H, -1)
    E = q.shape[-1]
    scale = 1.0 / math.sqrt(E)
    scores = jnp.einsum('blhe,she->bhls', q, k)
    A = jax.nn.softmax(scale * scores, axis=-1)
    out = jnp.einsum('bhls,she->blhe', A, v).reshape(B, L, H * E)
    return out @ wo + bo[0]


if __name__ == "__main__":
    # Small shapes consistent with the module's forward
    B, L = 2, 8
    d_model = 32
    n_heads = 4
    d_keys = d_model // n_heads          # default: d_model // n_heads = 8
    d_llm = 64
    S = 16
    HE = d_keys * n_heads

    key = jax.random.PRNGKey(0)
    ks = jax.random.split(key, 11)

    # Deterministic synthetic parameters (shapes from the nn.Linear layers)
    def init_linear(kw, kb, fan_in, fan_out):
        bound = 1.0 / math.sqrt(fan_in)
        w = jax.random.uniform(kw, (fan_in, fan_out), jnp.float32, -bound, bound)
        b = jax.random.uniform(kb, (1, fan_out), jnp.float32, -bound, bound)
        return w, b

    wq, bq = init_linear(ks[0], ks[1], d_model, HE)
    wk, bk = init_linear(ks[2], ks[3], d_llm, HE)
    wv, bv = init_linear(ks[4], ks[5], d_llm, HE)
    wo, bo = init_linear(ks[6], ks[7], HE, d_llm)
    params = (wq, bq, wk, bk, wv, bv, wo, bo)

    target = jax.random.normal(ks[8], (B, L, d_model), jnp.float32)
    source = jax.random.normal(ks[9], (S, d_llm), jnp.float32)
    value = jax.random.normal(ks[10], (S, d_llm), jnp.float32)

    fwd = jax.jit(lambda t, s, v: state_abstraction_layer(t, s, v, params, n_heads))
    out = jax.block_until_ready(fwd(target, source, value))

    ref = reference_forward(target, source, value, params, n_heads)
    assert out.shape == (B, L, d_llm)
    # bf16 MXU compute vs f32 reference -> relaxed tolerance.
    assert jnp.allclose(out, ref, atol=2e-2, rtol=2e-2), "mismatch vs reference"

    print("KERNEL_OK")
</pallas_src>

<mosaic_0001>
module attributes {stable_mosaic.version = 11 : i64} {
  func.func @_kv_projection_kernel(%arg0: i32, %arg1: memref<128x64xbf16, #tpu.memory_space<vmem>>, %arg2: memref<128x64xbf16, #tpu.memory_space<vmem>>, %arg3: memref<64x32xbf16, #tpu.memory_space<vmem>>, %arg4: memref<1x32xf32, #tpu.memory_space<vmem>>, %arg5: memref<64x32xbf16, #tpu.memory_space<vmem>>, %arg6: memref<1x32xf32, #tpu.memory_space<vmem>>, %arg7: memref<128x32xbf16, #tpu.memory_space<vmem>>, %arg8: memref<128x32xbf16, #tpu.memory_space<vmem>>) attributes {dimension_semantics = [#tpu.dimension_semantics<parallel>], iteration_bounds = array<i64: 1>, scalar_prefetch = 0 : i64, scratch_operands = 0 : i64, tpu.core_type = #tpu.core_type<tc>, window_params = [{transform_indices = @transform_0, window_bounds = array<i64: 128, 64>}, {transform_indices = @transform_1, window_bounds = array<i64: 128, 64>}, {pipeline_mode = #tpu.pipeline_mode<synchronous>, transform_indices = @transform_2, window_bounds = array<i64: 64, 32>}, {pipeline_mode = #tpu.pipeline_mode<synchronous>, transform_indices = @transform_3, window_bounds = array<i64: 1, 32>}, {pipeline_mode = #tpu.pipeline_mode<synchronous>, transform_indices = @transform_4, window_bounds = array<i64: 64, 32>}, {pipeline_mode = #tpu.pipeline_mode<synchronous>, transform_indices = @transform_5, window_bounds = array<i64: 1, 32>}, {transform_indices = @transform_6, window_bounds = array<i64: 128, 32>}, {transform_indices = @transform_7, window_bounds = array<i64: 128, 32>}]} {
    %c0 = arith.constant 0 : index
    %c0_0 = arith.constant 0 : index
    %0 = vector.load %arg1[%c0, %c0_0] : memref<128x64xbf16, #tpu.memory_space<vmem>>, vector<128x64xbf16>
    %c0_1 = arith.constant 0 : index
    %c0_2 = arith.constant 0 : index
    %1 = vector.load %arg3[%c0_1, %c0_2] : memref<64x32xbf16, #tpu.memory_space<vmem>>, vector<64x32xbf16>
    %cst = arith.constant dense<0.000000e+00> : vector<128x32xf32>
    %2 = tpu.matmul %0, %1, %cst {dimension_numbers = #tpu.dot_dimension_numbers<[1], [0], [0], [1], [0, 0, 1, 1], [], []>} : vector<128x64xbf16>, vector<64x32xbf16>, vector<128x32xf32> -> vector<128x32xf32>
    %c0_3 = arith.constant 0 : index
    %c0_4 = arith.constant 0 : index
    %3 = vector.load %arg4[%c0_3, %c0_4] : memref<1x32xf32, #tpu.memory_space<vmem>>, vector<1x32xf32>
    %4 = vector.broadcast %3 : vector<1x32xf32> to vector<128x32xf32>
    %5 = arith.addf %2, %4 : vector<128x32xf32>
    %c0_5 = arith.constant 0 : index
    %c0_6 = arith.constant 0 : index
    %6 = vector.load %arg2[%c0_5, %c0_6] : memref<128x64xbf16, #tpu.memory_space<vmem>>, vector<128x64xbf16>
    %c0_7 = arith.constant 0 : index
    %c0_8 = arith.constant 0 : index
    %7 = vector.load %arg5[%c0_7, %c0_8] : memref<64x32xbf16, #tpu.memory_space<vmem>>, vector<64x32xbf16>
    %cst_9 = arith.constant dense<0.000000e+00> : vector<128x32xf32>
    %8 = tpu.matmul %6, %7, %cst_9 {dimension_numbers = #tpu.dot_dimension_numbers<[1], [0], [0], [1], [0, 0, 1, 1], [], []>} : vector<128x64xbf16>, vector<64x32xbf16>, vector<128x32xf32> -> vector<128x32xf32>
    %c0_10 = arith.constant 0 : index
    %c0_11 = arith.constant 0 : index
    %9 = vector.load %arg6[%c0_10, %c0_11] : memref<1x32xf32, #tpu.memory_space<vmem>>, vector<1x32xf32>
    %10 = vector.broadcast %9 : vector<1x32xf32> to vector<128x32xf32>
    %11 = arith.addf %8, %10 : vector<128x32xf32>
    %12 = arith.truncf %5 : vector<128x32xf32> to vector<128x32xbf16>
    %c0_12 = arith.constant 0 : index
    %c0_13 = arith.constant 0 : index
    %13 = vector.load %arg7[%c0_12, %c0_13] : memref<128x32xbf16, #tpu.memory_space<vmem>>, vector<128x32xbf16>
    tpu.vector_store %arg7[%c0_12, %c0_13], %12 {strides = array<i32>} : memref<128x32xbf16, #tpu.memory_space<vmem>>, vector<128x32xbf16>,
    %14 = arith.truncf %11 : vector<128x32xf32> to vector<128x32xbf16>
    %c0_14 = arith.constant 0 : index
    %c0_15 = arith.constant 0 : index
    %15 = vector.load %arg8[%c0_14, %c0_15] : memref<128x32xbf16, #tpu.memory_space<vmem>>, vector<128x32xbf16>
    tpu.vector_store %arg8[%c0_14, %c0_15], %14 {strides = array<i32>} : memref<128x32xbf16, #tpu.memory_space<vmem>>, vector<128x32xbf16>,
    return
  }
  func.func @transform_0(%arg0: i32) -> (i32, i32) {
    %c0_i32 = arith.constant 0 : i32
    %c0_i32_0 = arith.constant 0 : i32
    return %arg0, %c0_i32 : i32, i32
  }
  func.func @transform_1(%arg0: i32) -> (i32, i32) {
    %c0_i32 = arith.constant 0 : i32
    %c0_i32_0 = arith.constant 0 : i32
    return %arg0, %c0_i32 : i32, i32
  }
  func.func @transform_2(%arg0: i32) -> (i32, i32) {
    %c0_i32 = arith.constant 0 : i32
    %c0_i32_0 = arith.constant 0 : i32
    %c0_i32_1 = arith.constant 0 : i32
    return %c0_i32, %c0_i32_0 : i32, i32
  }
  func.func @transform_3(%arg0: i32) -> (i32, i32) {
    %c0_i32 = arith.constant 0 : i32
    %c0_i32_0 = arith.constant 0 : i32
    %c0_i32_1 = arith.constant 0 : i32
    return %c0_i32, %c0_i32_0 : i32, i32
  }
  func.func @transform_4(%arg0: i32) -> (i32, i32) {
    %c0_i32 = arith.constant 0 : i32
    %c0_i32_0 = arith.constant 0 : i32
    %c0_i32_1 = arith.constant 0 : i32
    return %c0_i32, %c0_i32_0 : i32, i32
  }
  func.func @transform_5(%arg0: i32) -> (i32, i32) {
    %c0_i32 = arith.constant 0 : i32
    %c0_i32_0 = arith.constant 0 : i32
    %c0_i32_1 = arith.constant 0 : i32
    return %c0_i32, %c0_i32_0 : i32, i32
  }
  func.func @transform_6(%arg0: i32) -> (i32, i32) {
    %c0_i32 = arith.constant 0 : i32
    %c0_i32_0 = arith.constant 0 : i32
    return %arg0, %c0_i32 : i32, i32
  }
  func.func @transform_7(%arg0: i32) -> (i32, i32) {
    %c0_i32 = arith.constant 0 : i32
    %c0_i32_0 = arith.constant 0 : i32
    return %arg0, %c0_i32 : i32, i32
  }
}

module attributes {stable_mosaic.version = 11 : i64} {
  func.func @kernel(%arg0: i32, %arg1: memref<16x32xbf16, #tpu.memory_space<vmem>>, %arg2: memref<4x8x128xbf16, #tpu.memory_space<vmem>>, %arg3: memref<4x128x8xbf16, #tpu.memory_space<vmem>>, %arg4: memref<1x128xf32, #tpu.memory_space<vmem>>, %arg5: memref<32x32xbf16, #tpu.memory_space<vmem>>, %arg6: memref<1x32xf32, #tpu.memory_space<vmem>>, %arg7: memref<32x128xbf16, #tpu.memory_space<vmem>>, %arg8: memref<1x128xf32, #tpu.memory_space<vmem>>, %arg9: memref<16x128xf32, #tpu.memory_space<vmem>>, %arg10: memref<16x32xbf16, #tpu.memory_space<vmem>>) attributes {dimension_semantics = [#tpu.dimension_semantics<parallel>], iteration_bounds = array<i64: 1>, scalar_prefetch = 0 : i64, scratch_operands = 1 : i64, tpu.core_type = #tpu.core_type<tc>, window_params = [{transform_indices = @transform_0, window_bounds = array<i64: 16, 32>}, {pipeline_mode = #tpu.pipeline_mode<synchronous>, transform_indices = @transform_1, window_bounds = array<i64: 4, 8, 128>}, {pipeline_mode = #tpu.pipeline_mode<synchronous>, transform_indices = @transform_2, window_bounds = array<i64: 4, 128, 8>}, {pipeline_mode = #tpu.pipeline_mode<synchronous>, transform_indices = @transform_3, window_bounds = array<i64: 1, 128>}, {pipeline_mode = #tpu.pipeline_mode<synchronous>, transform_indices = @transform_4, window_bounds = array<i64: 32, 32>}, {pipeline_mode = #tpu.pipeline_mode<synchronous>, transform_indices = @transform_5, window_bounds = array<i64: 1, 32>}, {pipeline_mode = #tpu.pipeline_mode<synchronous>, transform_indices = @transform_6, window_bounds = array<i64: 32, 128>}, {pipeline_mode = #tpu.pipeline_mode<synchronous>, transform_indices = @transform_7, window_bounds = array<i64: 1, 128>}, {transform_indices = @transform_8, window_bounds = array<i64: 16, 128>}]} {
    %c0 = arith.constant 0 : index
    %c0_0 = arith.constant 0 : index
    %0 = vector.load %arg1[%c0, %c0_0] : memref<16x32xbf16, #tpu.memory_space<vmem>>, vector<16x32xbf16>
    %c0_1 = arith.constant 0 : index
    %c0_2 = arith.constant 0 : index
    %1 = vector.load %arg5[%c0_1, %c0_2] : memref<32x32xbf16, #tpu.memory_space<vmem>>, vector<32x32xbf16>
    %cst = arith.constant dense<0.000000e+00> : vector<16x32xf32>
    %2 = tpu.matmul %0, %1, %cst {dimension_numbers = #tpu.dot_dimension_numbers<[1], [0], [0], [1], [0, 0, 1, 1], [], []>} : vector<16x32xbf16>, vector<32x32xbf16>, vector<16x32xf32> -> vector<16x32xf32>
    %c0_3 = arith.constant 0 : index
    %c0_4 = arith.constant 0 : index
    %3 = vector.load %arg6[%c0_3, %c0_4] : memref<1x32xf32, #tpu.memory_space<vmem>>, vector<1x32xf32>
    %4 = vector.broadcast %3 : vector<1x32xf32> to vector<16x32xf32>
    %5 = arith.addf %2, %4 : vector<16x32xf32>
    %cst_5 = arith.constant 0.353553385 : f32
    %6 = vector.broadcast %cst_5 : f32 to vector<16x32xf32>
    %7 = arith.mulf %5, %6 : vector<16x32xf32>
    %8 = arith.truncf %7 : vector<16x32xf32> to vector<16x32xbf16>
    %c0_6 = arith.constant 0 : index
    %c0_7 = arith.constant 0 : index
    %9 = vector.load %arg4[%c0_6, %c0_7] : memref<1x128xf32, #tpu.memory_space<vmem>>, vector<1x128xf32>
    %10 = vector.extract_strided_slice %8 {offsets = [0, 0], sizes = [16, 8], strides = [1, 1]} : vector<16x32xbf16> to vector<16x8xbf16>
    %c0_8 = arith.constant 0 : index
    %c0_9 = arith.constant 0 : index
    %c0_10 = arith.constant 0 : index
    %11 = vector.load %arg2[%c0_8, %c0_9, %c0_10] : memref<4x8x128xbf16, #tpu.memory_space<vmem>>, vector<1x8x128xbf16>
    %12 = vector.shape_cast %11 : vector<1x8x128xbf16> to vector<8x128xbf16>
    %cst_11 = arith.constant dense<0.000000e+00> : vector<16x128xf32>
    %13 = tpu.matmul %10, %12, %cst_11 {dimension_numbers = #tpu.dot_dimension_numbers<[1], [0], [0], [1], [0, 0, 1, 1], [], []>} : vector<16x8xbf16>, vector<8x128xbf16>, vector<16x128xf32> -> vector<16x128xf32>
    %14 = vector.broadcast %9 : vector<1x128xf32> to vector<16x128xf32>
    %15 = arith.addf %13, %14 : vector<16x128xf32>
    %cst_12 = arith.constant dense<0xFF800000> : vector<16xf32>
    %16 = vector.multi_reduction <maximumf>, %15, %cst_12 [1] : vector<16x128xf32> to vector<16xf32>
    %17 = vector.shape_cast %16 : vector<16xf32> to vector<16x1xf32>
    %18 = vector.broadcast %17 : vector<16x1xf32> to vector<16x128xf32>
    %19 = arith.subf %15, %18 : vector<16x128xf32>
    %20 = math.exp %19 : vector<16x128xf32>
    %cst_13 = arith.constant dense<0.000000e+00> : vector<16xf32>
    %21 = vector.multi_reduction <add>, %20, %cst_13 [1] : vector<16x128xf32> to vector<16xf32>
    %22 = vector.shape_cast %21 : vector<16xf32> to vector<16x1xf32>
    %23 = tpu.reciprocal %22 {approx = true} : vector<16x1xf32> -> vector<16x1xf32>
    %24 = vector.broadcast %23 : vector<16x1xf32> to vector<16x128xf32>
    %25 = arith.mulf %20, %24 : vector<16x128xf32>
    %26 = arith.truncf %25 : vector<16x128xf32> to vector<16x128xbf16>
    %c0_14 = arith.constant 0 : index
    %c0_15 = arith.constant 0 : index
    %c0_16 = arith.constant 0 : index
    %27 = vector.load %arg3[%c0_14, %c0_15, %c0_16] : memref<4x128x8xbf16, #tpu.memory_space<vmem>>, vector<1x128x8xbf16>
    %28 = vector.shape_cast %27 : vector<1x128x8xbf16> to vector<128x8xbf16>
    %cst_17 = arith.constant dense<0.000000e+00> : vector<16x8xf32>
    %29 = tpu.matmul %26, %28, %cst_17 {dimension_numbers = #tpu.dot_dimension_numbers<[1], [0], [0], [1], [0, 0, 1, 1], [], []>} : vector<16x128xbf16>, vector<128x8xbf16>, vector<16x8xf32> -> vector<16x8xf32>
    %30 = arith.truncf %29 : vector<16x8xf32> to vector<16x8xbf16>
    %c0_18 = arith.constant 0 : index
    %c0_19 = arith.constant 0 : index
    %31 = vector.load %arg10[%c0_18, %c0_19] : memref<16x32xbf16, #tpu.memory_space<vmem>>, vector<16x8xbf16>
    tpu.vector_store %arg10[%c0_18, %c0_19], %30 {strides = array<i32>} : memref<16x32xbf16, #tpu.memory_space<vmem>>, vector<16x8xbf16>,
    %32 = vector.extract_strided_slice %8 {offsets = [0, 8], sizes = [16, 8], strides = [1, 1]} : vector<16x32xbf16> to vector<16x8xbf16>
    %c1 = arith.constant 1 : index
    %c0_20 = arith.constant 0 : index
    %c0_21 = arith.constant 0 : index
    %33 = vector.load %arg2[%c1, %c0_20, %c0_21] : memref<4x8x128xbf16, #tpu.memory_space<vmem>>, vector<1x8x128xbf16>
    %34 = vector.shape_cast %33 : vector<1x8x128xbf16> to vector<8x128xbf16>
    %cst_22 = arith.constant dense<0.000000e+00> : vector<16x128xf32>
    %35 = tpu.matmul %32, %34, %cst_22 {dimension_numbers = #tpu.dot_dimension_numbers<[1], [0], [0], [1], [0, 0, 1, 1], [], []>} : vector<16x8xbf16>, vector<8x128xbf16>, vector<16x128xf32> -> vector<16x128xf32>
    %36 = vector.broadcast %9 : vector<1x128xf32> to vector<16x128xf32>
    %37 = arith.addf %35, %36 : vector<16x128xf32>
    %cst_23 = arith.constant dense<0xFF800000> : vector<16xf32>
    %38 = vector.multi_reduction <maximumf>, %37, %cst_23 [1] : vector<16x128xf32> to vector<16xf32>
    %39 = vector.shape_cast %38 : vector<16xf32> to vector<16x1xf32>
    %40 = vector.broadcast %39 : vector<16x1xf32> to vector<16x128xf32>
    %41 = arith.subf %37, %40 : vector<16x128xf32>
    %42 = math.exp %41 : vector<16x128xf32>
    %cst_24 = arith.constant dense<0.000000e+00> : vector<16xf32>
    %43 = vector.multi_reduction <add>, %42, %cst_24 [1] : vector<16x128xf32> to vector<16xf32>
    %44 = vector.shape_cast %43 : vector<16xf32> to vector<16x1xf32>
    %45 = tpu.reciprocal %44 {approx = true} : vector<16x1xf32> -> vector<16x1xf32>
    %46 = vector.broadcast %45 : vector<16x1xf32> to vector<16x128xf32>
    %47 = arith.mulf %42, %46 : vector<16x128xf32>
    %48 = arith.truncf %47 : vector<16x128xf32> to vector<16x128xbf16>
    %c1_25 = arith.constant 1 : index
    %c0_26 = arith.constant 0 : index
    %c0_27 = arith.constant 0 : index
    %49 = vector.load %arg3[%c1_25, %c0_26, %c0_27] : memref<4x128x8xbf16, #tpu.memory_space<vmem>>, vector<1x128x8xbf16>
    %50 = vector.shape_cast %49 : vector<1x128x8xbf16> to vector<128x8xbf16>
    %cst_28 = arith.constant dense<0.000000e+00> : vector<16x8xf32>
    %51 = tpu.matmul %48, %50, %cst_28 {dimension_numbers = #tpu.dot_dimension_numbers<[1], [0], [0], [1], [0, 0, 1, 1], [], []>} : vector<16x128xbf16>, vector<128x8xbf16>, vector<16x8xf32> -> vector<16x8xf32>
    %52 = arith.truncf %51 : vector<16x8xf32> to vector<16x8xbf16>
    %c0_29 = arith.constant 0 : index
    %c8 = arith.constant 8 : index
    %53 = vector.load %arg10[%c0_29, %c8] : memref<16x32xbf16, #tpu.memory_space<vmem>>, vector<16x8xbf16>
    tpu.vector_store %arg10[%c0_29, %c8], %52 {strides = array<i32>} : memref<16x32xbf16, #tpu.memory_space<vmem>>, vector<16x8xbf16>,
    %54 = vector.extract_strided_slice %8 {offsets = [0, 16], sizes = [16, 8], strides = [1, 1]} : vector<16x32xbf16> to vector<16x8xbf16>
    %c2 = arith.constant 2 : index
    %c0_30 = arith.constant 0 : index
    %c0_31 = arith.constant 0 : index
    %55 = vector.load %arg2[%c2, %c0_30, %c0_31] : memref<4x8x128xbf16, #tpu.memory_space<vmem>>, vector<1x8x128xbf16>
    %56 = vector.shape_cast %55 : vector<1x8x128xbf16> to vector<8x128xbf16>
    %cst_32 = arith.constant dense<0.000000e+00> : vector<16x128xf32>
    %57 = tpu.matmul %54, %56, %cst_32 {dimension_numbers = #tpu.dot_dimension_numbers<[1], [0], [0], [1], [0, 0, 1, 1], [], []>} : vector<16x8xbf16>, vector<8x128xbf16>, vector<16x128xf32> -> vector<16x128xf32>
    %58 = vector.broadcast %9 : vector<1x128xf32> to vector<16x128xf32>
    %59 = arith.addf %57, %58 : vector<16x128xf32>
    %cst_33 = arith.constant dense<0xFF800000> : vector<16xf32>
    %60 = vector.multi_reduction <maximumf>, %59, %cst_33 [1] : vector<16x128xf32> to vector<16xf32>
    %61 = vector.shape_cast %60 : vector<16xf32> to vector<16x1xf32>
    %62 = vector.broadcast %61 : vector<16x1xf32> to vector<16x128xf32>
    %63 = arith.subf %59, %62 : vector<16x128xf32>
    %64 = math.exp %63 : vector<16x128xf32>
    %cst_34 = arith.constant dense<0.000000e+00> : vector<16xf32>
    %65 = vector.multi_reduction <add>, %64, %cst_34 [1] : vector<16x128xf32> to vector<16xf32>
    %66 = vector.shape_cast %65 : vector<16xf32> to vector<16x1xf32>
    %67 = tpu.reciprocal %66 {approx = true} : vector<16x1xf32> -> vector<16x1xf32>
    %68 = vector.broadcast %67 : vector<16x1xf32> to vector<16x128xf32>
    %69 = arith.mulf %64, %68 : vector<16x128xf32>
    %70 = arith.truncf %69 : vector<16x128xf32> to vector<16x128xbf16>
    %c2_35 = arith.constant 2 : index
    %c0_36 = arith.constant 0 : index
    %c0_37 = arith.constant 0 : index
    %71 = vector.load %arg3[%c2_35, %c0_36, %c0_37] : memref<4x128x8xbf16, #tpu.memory_space<vmem>>, vector<1x128x8xbf16>
    %72 = vector.shape_cast %71 : vector<1x128x8xbf16> to vector<128x8xbf16>
    %cst_38 = arith.constant dense<0.000000e+00> : vector<16x8xf32>
    %73 = tpu.matmul %70, %72, %cst_38 {dimension_numbers = #tpu.dot_dimension_numbers<[1], [0], [0], [1], [0, 0, 1, 1], [], []>} : vector<16x128xbf16>, vector<128x8xbf16>, vector<16x8xf32> -> vector<16x8xf32>
    %74 = arith.truncf %73 : vector<16x8xf32> to vector<16x8xbf16>
    %c0_39 = arith.constant 0 : index
    %c16 = arith.constant 16 : index
    %75 = vector.load %arg10[%c0_39, %c16] : memref<16x32xbf16, #tpu.memory_space<vmem>>, vector<16x8xbf16>
    tpu.vector_store %arg10[%c0_39, %c16], %74 {strides = array<i32>} : memref<16x32xbf16, #tpu.memory_space<vmem>>, vector<16x8xbf16>,
    %76 = vector.extract_strided_slice %8 {offsets = [0, 24], sizes = [16, 8], strides = [1, 1]} : vector<16x32xbf16> to vector<16x8xbf16>
    %c3 = arith.constant 3 : index
    %c0_40 = arith.constant 0 : index
    %c0_41 = arith.constant 0 : index
    %77 = vector.load %arg2[%c3, %c0_40, %c0_41] : memref<4x8x128xbf16, #tpu.memory_space<vmem>>, vector<1x8x128xbf16>
    %78 = vector.shape_cast %77 : vector<1x8x128xbf16> to vector<8x128xbf16>
    %cst_42 = arith.constant dense<0.000000e+00> : vector<16x128xf32>
    %79 = tpu.matmul %76, %78, %cst_42 {dimension_numbers = #tpu.dot_dimension_numbers<[1], [0], [0], [1], [0, 0, 1, 1], [], []>} : vector<16x8xbf16>, vector<8x128xbf16>, vector<16x128xf32> -> vector<16x128xf32>
    %80 = vector.broadcast %9 : vector<1x128xf32> to vector<16x128xf32>
    %81 = arith.addf %79, %80 : vector<16x128xf32>
    %cst_43 = arith.constant dense<0xFF800000> : vector<16xf32>
    %82 = vector.multi_reduction <maximumf>, %81, %cst_43 [1] : vector<16x128xf32> to vector<16xf32>
    %83 = vector.shape_cast %82 : vector<16xf32> to vector<16x1xf32>
    %84 = vector.broadcast %83 : vector<16x1xf32> to vector<16x128xf32>
    %85 = arith.subf %81, %84 : vector<16x128xf32>
    %86 = math.exp %85 : vector<16x128xf32>
    %cst_44 = arith.constant dense<0.000000e+00> : vector<16xf32>
    %87 = vector.multi_reduction <add>, %86, %cst_44 [1] : vector<16x128xf32> to vector<16xf32>
    %88 = vector.shape_cast %87 : vector<16xf32> to vector<16x1xf32>
    %89 = tpu.reciprocal %88 {approx = true} : vector<16x1xf32> -> vector<16x1xf32>
    %90 = vector.broadcast %89 : vector<16x1xf32> to vector<16x128xf32>
    %91 = arith.mulf %86, %90 : vector<16x128xf32>
    %92 = arith.truncf %91 : vector<16x128xf32> to vector<16x128xbf16>
    %c3_45 = arith.constant 3 : index
    %c0_46 = arith.constant 0 : index
    %c0_47 = arith.constant 0 : index
    %93 = vector.load %arg3[%c3_45, %c0_46, %c0_47] : memref<4x128x8xbf16, #tpu.memory_space<vmem>>, vector<1x128x8xbf16>
    %94 = vector.shape_cast %93 : vector<1x128x8xbf16> to vector<128x8xbf16>
    %cst_48 = arith.constant dense<0.000000e+00> : vector<16x8xf32>
    %95 = tpu.matmul %92, %94, %cst_48 {dimension_numbers = #tpu.dot_dimension_numbers<[1], [0], [0], [1], [0, 0, 1, 1], [], []>} : vector<16x128xbf16>, vector<128x8xbf16>, vector<16x8xf32> -> vector<16x8xf32>
    %96 = arith.truncf %95 : vector<16x8xf32> to vector<16x8xbf16>
    %c0_49 = arith.constant 0 : index
    %c24 = arith.constant 24 : index
    %97 = vector.load %arg10[%c0_49, %c24] : memref<16x32xbf16, #tpu.memory_space<vmem>>, vector<16x8xbf16>
    tpu.vector_store %arg10[%c0_49, %c24], %96 {strides = array<i32>} : memref<16x32xbf16, #tpu.memory_space<vmem>>, vector<16x8xbf16>,
    %c0_50 = arith.constant 0 : index
    %c0_51 = arith.constant 0 : index
    %98 = vector.load %arg10[%c0_50, %c0_51] : memref<16x32xbf16, #tpu.memory_space<vmem>>, vector<16x32xbf16>
    %c0_52 = arith.constant 0 : index
    %c0_53 = arith.constant 0 : index
    %99 = vector.load %arg7[%c0_52, %c0_53] : memref<32x128xbf16, #tpu.memory_space<vmem>>, vector<32x128xbf16>
    %cst_54 = arith.constant dense<0.000000e+00> : vector<16x128xf32>
    %100 = tpu.matmul %98, %99, %cst_54 {dimension_numbers = #tpu.dot_dimension_numbers<[1], [0], [0], [1], [0, 0, 1, 1], [], []>} : vector<16x32xbf16>, vector<32x128xbf16>, vector<16x128xf32> -> vector<16x128xf32>
    %c0_55 = arith.constant 0 : index
    %c0_56 = arith.constant 0 : index
    %101 = vector.load %arg8[%c0_55, %c0_56] : memref<1x128xf32, #tpu.memory_space<vmem>>, vector<1x128xf32>
    %102 = vector.broadcast %101 : vector<1x128xf32> to vector<16x128xf32>
    %103 = arith.addf %100, %102 : vector<16x128xf32>
    %c0_57 = arith.constant 0 : index
    %c0_58 = arith.constant 0 : index
    %104 = vector.load %arg9[%c0_57, %c0_58] : memref<16x128xf32, #tpu.memory_space<vmem>>, vector<16x128xf32>
    tpu.vector_store %arg9[%c0_57, %c0_58], %103 {strides = array<i32>} : memref<16x128xf32, #tpu.memory_space<vmem>>, vector<16x128xf32>,
    return
  }
  func.func @transform_0(%arg0: i32) -> (i32, i32) {
    %c0_i32 = arith.constant 0 : i32
    %c0_i32_0 = arith.constant 0 : i32
    return %arg0, %c0_i32 : i32, i32
  }
  func.func @transform_1(%arg0: i32) -> (i32, i32, i32) {
    %c0_i32 = arith.constant 0 : i32
    %c0_i32_0 = arith.constant 0 : i32
    %c0_i32_1 = arith.constant 0 : i32
    %c0_i32_2 = arith.constant 0 : i32
    return %c0_i32, %c0_i32_0, %c0_i32_1 : i32, i32, i32
  }
  func.func @transform_2(%arg0: i32) -> (i32, i32, i32) {
    %c0_i32 = arith.constant 0 : i32
    %c0_i32_0 = arith.constant 0 : i32
    %c0_i32_1 = arith.constant 0 : i32
    %c0_i32_2 = arith.constant 0 : i32
    return %c0_i32, %c0_i32_0, %c0_i32_1 : i32, i32, i32
  }
  func.func @transform_3(%arg0: i32) -> (i32, i32) {
    %c0_i32 = arith.constant 0 : i32
    %c0_i32_0 = arith.constant 0 : i32
    %c0_i32_1 = arith.constant 0 : i32
    return %c0_i32, %c0_i32_0 : i32, i32
  }
  func.func @transform_4(%arg0: i32) -> (i32, i32) {
    %c0_i32 = arith.constant 0 : i32
    %c0_i32_0 = arith.constant 0 : i32
    %c0_i32_1 = arith.constant 0 : i32
    return %c0_i32, %c0_i32_0 : i32, i32
  }
  func.func @transform_5(%arg0: i32) -> (i32, i32) {
    %c0_i32 = arith.constant 0 : i32
    %c0_i32_0 = arith.constant 0 : i32
    %c0_i32_1 = arith.constant 0 : i32
    return %c0_i32, %c0_i32_0 : i32, i32
  }
  func.func @transform_6(%arg0: i32) -> (i32, i32) {
    %c0_i32 = arith.constant 0 : i32
    %c0_i32_0 = arith.constant 0 : i32
    %c0_i32_1 = arith.constant 0 : i32
    return %c0_i32, %c0_i32_0 : i32, i32
  }
  func.func @transform_7(%arg0: i32) -> (i32, i32) {
    %c0_i32 = arith.constant 0 : i32
    %c0_i32_0 = arith.constant 0 : i32
    %c0_i32_1 = arith.constant 0 : i32
    return %c0_i32, %c0_i32_0 : i32, i32
  }
  func.func @transform_8(%arg0: i32) -> (i32, i32) {
    %c0_i32 = arith.constant 0 : i32
    %c0_i32_0 = arith.constant 0 : i32
    return %arg0, %c0_i32 : i32, i32
  }
}

</mosaic_0001>

<bundles_post_ra>
// kernel: _lambda_.2
= control target key start
LH: loop header
LB: loop body
LE: loop exit
PB: predicated region body
PF: predicated region fallthrough
CT: control target
= control target key end

     0   :  { %vm118_vm0 = vcmask 523264   ;;  %vm373_vm1 = vcmask 257024   ;;  %s874_s2 = inlined_call_operand.vmem [shape: bf16[64,32], index: 2, kind: input, shape index: {}]   ;;  %s875_s4 = inlined_call_operand.vmem [shape: bf16[64,32], index: 4, kind: input, shape index: {}]   ;;  %s876_s3 = inlined_call_operand.vmem [shape: f32[1,32], index: 3, kind: input, shape index: {}]   ;;  %s877_s0 = inlined_call_operand.vmem [shape: bf16[128,64], index: 0, kind: input, shape index: {}]   ;;  %s878_s1 = inlined_call_operand.vmem [shape: bf16[128,64], index: 1, kind: input, shape index: {}]   ;;  %s879_s5 = inlined_call_operand.vmem [shape: f32[1,32], index: 5, kind: input, shape index: {}]   ;;  %s880_s6 = inlined_call_operand.vmem [shape: bf16[128,32], index: 6, kind: output, shape index: {0}]   ;;  %s881_s7 = inlined_call_operand.vmem [shape: bf16[128,32], index: 7, kind: output, shape index: {1}]  }
   0x1   :  { %v553_v0 = vld [vmem:[%s874_s2 + $0x18] sm:$0xff]  ;;  %v552_v2 = vld [vmem:[%s874_s2 + $0x10] sm:$0xff]  ;;  %v551_v4 = vld [vmem:[%s874_s2 + $0x8] sm:$0xff] }
   0x2   :  { %v565_v1 = vld [vmem:[%s875_s4 + $0x18] sm:$0xff]  ;;  %147 = vmatpush.bf16.msra.mxu0 %v553_v0  ;;  %566 = vmatpush.bf16.msra.mxu2 %v553_v0  ;;  %v564_v3 = vld [vmem:[%s875_s4 + $0x10] sm:$0xff]  ;;  %v563_v5 = vld [vmem:[%s875_s4 + $0x8] sm:$0xff] }
   0x3   :  { %312 = vmatpush.bf16.msra.mxu1 %v565_v1  ;;  %570 = vmatpush.bf16.msra.mxu3 %v565_v1  ;;  %v550_v6 = vld [vmem:[%s874_s2] sm:$0xff]  ;;  %v543_v12 = vld [vmem:[%s877_s0 + $0x8] sm:$0xff]  ;;  %v544_v16 = vld [vmem:[%s877_s0 + $0x10] sm:$0xff] }
   0x4   :  { %v562_v7 = vld [vmem:[%s875_s4] sm:$0xff]  ;;  %v547_v13 = vld [vmem:[%s877_s0 + $0x28] sm:$0xff]  ;;  %v548_v17 = vld [vmem:[%s877_s0 + $0x30] sm:$0xff] }
   0x5   :  { %v542_v8 = vld [vmem:[%s877_s0] sm:$0xff]  ;;  %v555_v14 = vld [vmem:[%s878_s1 + $0x8] sm:$0xff]  ;;  %v556_v18 = vld [vmem:[%s878_s1 + $0x10] sm:$0xff] }
   0x6   :  { %148 = vmatpush.bf16.msra.mxu0 %v552_v2  ;;  %567 = vmatpush.bf16.msra.mxu2 %v552_v2  ;;  %v546_v9 = vld [vmem:[%s877_s0 + $0x20] sm:$0xff]  ;;  %v559_v15 = vld [vmem:[%s878_s1 + $0x28] sm:$0xff]  ;;  %v560_v19 = vld [vmem:[%s878_s1 + $0x30] sm:$0xff] }
   0x7   :  { %313 = vmatpush.bf16.msra.mxu1 %v564_v3  ;;  %571 = vmatpush.bf16.msra.mxu3 %v564_v3  ;;  %v554_v10 = vld [vmem:[%s878_s1] sm:$0xff]  ;;  %v545_v20 = vld [vmem:[%s877_s0 + $0x18] sm:$0xff] }
   0x8   :  { %v558_v11 = vld [vmem:[%s878_s1 + $0x20] sm:$0xff]  ;;  %v549_v21 = vld [vmem:[%s877_s0 + $0x38] sm:$0xff] }
   0x9   :  { %v557_v22 = vld [vmem:[%s878_s1 + $0x18] sm:$0xff]  ;;  %v707_v24 = vld [vmem:[%s876_s3] ss:$0 sm:$0xff] }
   0xa   :  { %149 = vmatpush.bf16.msra.mxu0 %v551_v4  ;;  %568 = vmatpush.bf16.msra.mxu2 %v551_v4  ;;  %v561_v23 = vld [vmem:[%s878_s1 + $0x38] sm:$0xff]  ;;  %v712_v25 = vld [vmem:[%s879_s5] ss:$0 sm:$0xff] }
   0xb   :  { %314 = vmatpush.bf16.msra.mxu1 %v563_v5  ;;  %572 = vmatpush.bf16.msra.mxu3 %v563_v5 }
   0xe   :  { %150 = vmatpush.bf16.msra.mxu0 %v550_v6  ;;  %569 = vmatpush.bf16.msra.mxu2 %v550_v6 }
   0xf   :  { %315 = vmatpush.bf16.msra.mxu1 %v562_v7  ;;  %573 = vmatpush.bf16.msra.mxu3 %v562_v7 }
  0x11   :  { %478 = vmatmul.msk.bf16.vlgmr.msra.gmra.mxu0 %vm118_vm0, %v542_v8  ;;  %482 = vmatmul.msk.bf16.vlgmr.msra.gmra.mxu2 %vm118_vm0, %v546_v9 }
  0x12   :  { %534 = vmatmul.msk.bf16.vlgmr.msra.gmra.mxu1 %vm118_vm0, %v554_v10  ;;  %538 = vmatmul.msk.bf16.vlgmr.msra.gmra.mxu3 %vm118_vm0, %v558_v11 }
  0x21   :  { %479 = vmatmul.msk.bf16.gmra.mxu0 %vm118_vm0, %v543_v12  ;;  %483 = vmatmul.msk.bf16.gmra.mxu2 %vm118_vm0, %v547_v13 }
  0x22   :  { %535 = vmatmul.msk.bf16.gmra.mxu1 %vm118_vm0, %v555_v14  ;;  %539 = vmatmul.msk.bf16.gmra.mxu3 %vm118_vm0, %v559_v15 }
  0x31   :  { %480 = vmatmul.msk.bf16.gmra.mxu0 %vm118_vm0, %v544_v16  ;;  %484 = vmatmul.msk.bf16.gmra.mxu2 %vm118_vm0, %v548_v17 }
  0x32   :  { %536 = vmatmul.msk.bf16.gmra.mxu1 %vm118_vm0, %v556_v18  ;;  %540 = vmatmul.msk.bf16.gmra.mxu3 %vm118_vm0, %v560_v19 }
  0x41   :  { %481 = vmatmul.msk.bf16.gmra.mxu0 %vm118_vm0, %v545_v20  ;;  %485 = vmatmul.msk.bf16.gmra.mxu2 %vm118_vm0, %v549_v21 }
  0x42   :  { %537 = vmatmul.msk.bf16.gmra.mxu1 %vm118_vm0, %v557_v22  ;;  %541 = vmatmul.msk.bf16.gmra.mxu3 %vm118_vm0, %v561_v23 }
  0x8e   :  { %v152_v26 = vpop.f32.mrf.mxu0 }
  0x8f   :  { %v153_v27 = vadd.f32 %v707_v24, %v152_v26  ;;  %v317_v28 = vpop.f32.mrf.mxu1 }
  0x90   :  { %v318_v29 = vadd.f32 %v712_v25, %v317_v28 }
  0x91   :  { %v357_v30 = vpack.c.bf16 %v153_v27, %v153_v27 }
  0x92   :  { %v390_v31 = vpack.c.bf16 %v318_v29, %v318_v29 }
  0x93   :  { %374 = vst.msk [vmem:[%s880_s6] sm:$0xf] %vm373_vm1, %v357_v30 }
  0x94   :  { %406 = vst.msk [vmem:[%s881_s7] sm:$0xf] %vm373_vm1, %v390_v31  ;;  %v172_v32 = vpop.f32.mrf.mxu2 }
  0x95   :  { %v173_v33 = vadd.f32 %v707_v24, %v172_v32  ;;  %v337_v34 = vpop.f32.mrf.mxu3 }
  0x96   :  { %v338_v35 = vadd.f32 %v712_v25, %v337_v34  ;;  %v154_v36 = vpop.f32.mrf.mxu0 }
  0x97   :  { %v365_v37 = vpack.c.bf16 %v173_v33, %v173_v33  ;;  %v155_v38 = vadd.f32 %v707_v24, %v154_v36  ;;  %v319_v39 = vpop.f32.mrf.mxu1 }
  0x98   :  { %v398_v40 = vpack.c.bf16 %v338_v35, %v338_v35  ;;  %v320_v41 = vadd.f32 %v712_v25, %v319_v39 }
  0x99   :  { %382 = vst.msk [vmem:[%s880_s6 + $0x20] sm:$0xf] %vm373_vm1, %v365_v37  ;;  %v358_v42 = vpack.c.bf16 %v155_v38, %v155_v38 }
  0x9a   :  { %414 = vst.msk [vmem:[%s881_s7 + $0x20] sm:$0xf] %vm373_vm1, %v398_v40  ;;  %v391_v43 = vpack.c.bf16 %v320_v41, %v320_v41 }
  0x9b   :  { %375 = vst.msk [vmem:[%s880_s6 + $0x4] sm:$0xf] %vm373_vm1, %v358_v42 }
  0x9c   :  { %407 = vst.msk [vmem:[%s881_s7 + $0x4] sm:$0xf] %vm373_vm1, %v391_v43  ;;  %v174_v44 = vpop.f32.mrf.mxu2 }
  0x9d   :  { %v175_v45 = vadd.f32 %v707_v24, %v174_v44  ;;  %v339_v46 = vpop.f32.mrf.mxu3 }
  0x9e   :  { %v340_v47 = vadd.f32 %v712_v25, %v339_v46  ;;  %v157_v48 = vpop.f32.mrf.mxu0 }
  0x9f   :  { %v366_v49 = vpack.c.bf16 %v175_v45, %v175_v45  ;;  %v158_v50 = vadd.f32 %v707_v24, %v157_v48  ;;  %v322_v51 = vpop.f32.mrf.mxu1 }
  0xa0   :  { %v399_v52 = vpack.c.bf16 %v340_v47, %v340_v47  ;;  %v323_v53 = vadd.f32 %v712_v25, %v322_v51 }
  0xa1   :  { %383 = vst.msk [vmem:[%s880_s6 + $0x24] sm:$0xf] %vm373_vm1, %v366_v49  ;;  %v359_v54 = vpack.c.bf16 %v158_v50, %v158_v50 }
  0xa2   :  { %415 = vst.msk [vmem:[%s881_s7 + $0x24] sm:$0xf] %vm373_vm1, %v399_v52  ;;  %v392_v55 = vpack.c.bf16 %v323_v53, %v323_v53 }
  0xa3   :  { %376 = vst.msk [vmem:[%s880_s6 + $0x8] sm:$0xf] %vm373_vm1, %v359_v54 }
  0xa4   :  { %408 = vst.msk [vmem:[%s881_s7 + $0x8] sm:$0xf] %vm373_vm1, %v392_v55  ;;  %v177_v56 = vpop.f32.mrf.mxu2 }
  0xa5   :  { %v178_v57 = vadd.f32 %v707_v24, %v177_v56  ;;  %v342_v58 = vpop.f32.mrf.mxu3 }
  0xa6   :  { %v343_v59 = vadd.f32 %v712_v25, %v342_v58  ;;  %v159_v60 = vpop.f32.mrf.mxu0 }
  0xa7   :  { %v367_v61 = vpack.c.bf16 %v178_v57, %v178_v57  ;;  %v160_v62 = vadd.f32 %v707_v24, %v159_v60  ;;  %v324_v63 = vpop.f32.mrf.mxu1 }
  0xa8   :  { %v400_v0 = vpack.c.bf16 %v343_v59, %v343_v59  ;;  %v325_v1 = vadd.f32 %v712_v25, %v324_v63 }
  0xa9   :  { %384 = vst.msk [vmem:[%s880_s6 + $0x28] sm:$0xf] %vm373_vm1, %v367_v61  ;;  %v360_v2 = vpack.c.bf16 %v160_v62, %v160_v62 }
  0xaa   :  { %416 = vst.msk [vmem:[%s881_s7 + $0x28] sm:$0xf] %vm373_vm1, %v400_v0  ;;  %v393_v3 = vpack.c.bf16 %v325_v1, %v325_v1 }
  0xab   :  { %377 = vst.msk [vmem:[%s880_s6 + $0xc] sm:$0xf] %vm373_vm1, %v360_v2 }
  0xac   :  { %409 = vst.msk [vmem:[%s881_s7 + $0xc] sm:$0xf] %vm373_vm1, %v393_v3  ;;  %v179_v4 = vpop.f32.mrf.mxu2 }
  0xad   :  { %v180_v5 = vadd.f32 %v707_v24, %v179_v4  ;;  %v344_v6 = vpop.f32.mrf.mxu3 }
  0xae   :  { %v345_v7 = vadd.f32 %v712_v25, %v344_v6  ;;  %v162_v8 = vpop.f32.mrf.mxu0 }
  0xaf   :  { %v368_v9 = vpack.c.bf16 %v180_v5, %v180_v5  ;;  %v163_v10 = vadd.f32 %v707_v24, %v162_v8  ;;  %v327_v11 = vpop.f32.mrf.mxu1 }
  0xb0   :  { %v401_v12 = vpack.c.bf16 %v345_v7, %v345_v7  ;;  %v328_v13 = vadd.f32 %v712_v25, %v327_v11 }
  0xb1   :  { %385 = vst.msk [vmem:[%s880_s6 + $0x2c] sm:$0xf] %vm373_vm1, %v368_v9  ;;  %v361_v14 = vpack.c.bf16 %v163_v10, %v163_v10 }
  0xb2   :  { %417 = vst.msk [vmem:[%s881_s7 + $0x2c] sm:$0xf] %vm373_vm1, %v401_v12  ;;  %v394_v15 = vpack.c.bf16 %v328_v13, %v328_v13 }
  0xb3   :  { %378 = vst.msk [vmem:[%s880_s6 + $0x10] sm:$0xf] %vm373_vm1, %v361_v14 }
  0xb4   :  { %410 = vst.msk [vmem:[%s881_s7 + $0x10] sm:$0xf] %vm373_vm1, %v394_v15  ;;  %v182_v16 = vpop.f32.mrf.mxu2 }
  0xb5   :  { %v183_v17 = vadd.f32 %v707_v24, %v182_v16  ;;  %v347_v18 = vpop.f32.mrf.mxu3 }
  0xb6   :  { %v348_v19 = vadd.f32 %v712_v25, %v347_v18  ;;  %v164_v20 = vpop.f32.mrf.mxu0 }
  0xb7   :  { %v369_v21 = vpack.c.bf16 %v183_v17, %v183_v17  ;;  %v165_v22 = vadd.f32 %v707_v24, %v164_v20  ;;  %v329_v23 = vpop.f32.mrf.mxu1 }
  0xb8   :  { %v402_v26 = vpack.c.bf16 %v348_v19, %v348_v19  ;;  %v330_v27 = vadd.f32 %v712_v25, %v329_v23 }
  0xb9   :  { %386 = vst.msk [vmem:[%s880_s6 + $0x30] sm:$0xf] %vm373_vm1, %v369_v21  ;;  %v362_v28 = vpack.c.bf16 %v165_v22, %v165_v22 }
  0xba   :  { %418 = vst.msk [vmem:[%s881_s7 + $0x30] sm:$0xf] %vm373_vm1, %v402_v26  ;;  %v395_v29 = vpack.c.bf16 %v330_v27, %v330_v27 }
  0xbb   :  { %379 = vst.msk [vmem:[%s880_s6 + $0x14] sm:$0xf] %vm373_vm1, %v362_v28 }
  0xbc   :  { %411 = vst.msk [vmem:[%s881_s7 + $0x14] sm:$0xf] %vm373_vm1, %v395_v29  ;;  %v184_v30 = vpop.f32.mrf.mxu2 }
  0xbd   :  { %v185_v31 = vadd.f32 %v707_v24, %v184_v30  ;;  %v349_v32 = vpop.f32.mrf.mxu3 }
  0xbe   :  { %v350_v33 = vadd.f32 %v712_v25, %v349_v32  ;;  %v167_v34 = vpop.f32.mrf.mxu0 }
  0xbf   :  { %v370_v35 = vpack.c.bf16 %v185_v31, %v185_v31  ;;  %v168_v36 = vadd.f32 %v707_v24, %v167_v34  ;;  %v332_v37 = vpop.f32.mrf.mxu1 }
  0xc0   :  { %v403_v38 = vpack.c.bf16 %v350_v33, %v350_v33  ;;  %v333_v39 = vadd.f32 %v712_v25, %v332_v37 }
  0xc1   :  { %387 = vst.msk [vmem:[%s880_s6 + $0x34] sm:$0xf] %vm373_vm1, %v370_v35  ;;  %v363_v40 = vpack.c.bf16 %v168_v36, %v168_v36 }
  0xc2   :  { %419 = vst.msk [vmem:[%s881_s7 + $0x34] sm:$0xf] %vm373_vm1, %v403_v38  ;;  %v396_v41 = vpack.c.bf16 %v333_v39, %v333_v39 }
  0xc3   :  { %380 = vst.msk [vmem:[%s880_s6 + $0x18] sm:$0xf] %vm373_vm1, %v363_v40 }
  0xc4   :  { %412 = vst.msk [vmem:[%s881_s7 + $0x18] sm:$0xf] %vm373_vm1, %v396_v41  ;;  %v187_v42 = vpop.f32.mrf.mxu2 }
  0xc5   :  { %v188_v43 = vadd.f32 %v707_v24, %v187_v42  ;;  %v352_v44 = vpop.f32.mrf.mxu3 }
  0xc6   :  { %v353_v45 = vadd.f32 %v712_v25, %v352_v44  ;;  %v169_v46 = vpop.f32.mrf.mxu0 }
  0xc7   :  { %v371_v47 = vpack.c.bf16 %v188_v43, %v188_v43  ;;  %v170_v48 = vadd.f32 %v707_v24, %v169_v46  ;;  %v334_v49 = vpop.f32.mrf.mxu1 }
  0xc8   :  { %v404_v50 = vpack.c.bf16 %v353_v45, %v353_v45  ;;  %v335_v51 = vadd.f32 %v712_v25, %v334_v49 }
  0xc9   :  { %388 = vst.msk [vmem:[%s880_s6 + $0x38] sm:$0xf] %vm373_vm1, %v371_v47  ;;  %v364_v52 = vpack.c.bf16 %v170_v48, %v170_v48 }
  0xca   :  { %420 = vst.msk [vmem:[%s881_s7 + $0x38] sm:$0xf] %vm373_vm1, %v404_v50  ;;  %v397_v53 = vpack.c.bf16 %v335_v51, %v335_v51 }
  0xcb   :  { %381 = vst.msk [vmem:[%s880_s6 + $0x1c] sm:$0xf] %vm373_vm1, %v364_v52 }
  0xcc   :  { %413 = vst.msk [vmem:[%s881_s7 + $0x1c] sm:$0xf] %vm373_vm1, %v397_v53  ;;  %v189_v54 = vpop.f32.mrf.mxu2 }
  0xcd   :  { %v190_v55 = vadd.f32 %v707_v24, %v189_v54  ;;  %v354_v56 = vpop.f32.mrf.mxu3 }
  0xce   :  { %v355_v57 = vadd.f32 %v712_v25, %v354_v56 }
  0xcf   :  { %v372_v58 = vpack.c.bf16 %v190_v55, %v190_v55 }
  0xd0   :  { %v405_v59 = vpack.c.bf16 %v355_v57, %v355_v57 }
  0xd1   :  { %389 = vst.msk [vmem:[%s880_s6 + $0x3c] sm:$0xf] %vm373_vm1, %v372_v58 }
  0xd2   :  { %421 = vst.msk [vmem:[%s881_s7 + $0x3c] sm:$0xf] %vm373_vm1, %v405_v59 }

// kernel: _lambda_.3
= control target key start
LH: loop header
LB: loop body
LE: loop exit
PB: predicated region body
PF: predicated region fallthrough
CT: control target
= control target key end

     0   :  { %vm57_vm0 = vcmask 261120   ;;  %vm93_vm1 = vcmask 1043456   ;;  %vm89_vm2 = vcmask 64512   ;;  %s956_s15 = smov 104   ;;  %s957_s16 = smov 120   ;;  %vm210_vm3 = vcmask 60416   ;;  %s1187_s4 = inlined_call_operand.vmem [shape: bf16[32,32], index: 4, kind: input, shape index: {}]   ;;  %s1188_s5 = inlined_call_operand.vmem [shape: f32[1,32], index: 5, kind: input, shape index: {}]   ;;  %s1189_s0 = inlined_call_operand.vmem [shape: bf16[16,32], index: 0, kind: input, shape index: {}]   ;;  %s1190_s1 = inlined_call_operand.vmem [shape: bf16[4,8,128], index: 1, kind: input, shape index: {}]   ;;  %s1191_s3 = inlined_call_operand.vmem [shape: f32[1,128], index: 3, kind: input, shape index: {}]   ;;  %s1192_s2 = inlined_call_operand.vmem [shape: bf16[4,128,8], index: 2, kind: input, shape index: {}]   ;;  %s1193_s7 = inlined_call_operand.vmem [shape: f32[1,128], index: 7, kind: input, shape index: {}]   ;;  %s1194_s6 = inlined_call_operand.vmem [shape: bf16[32,128], index: 6, kind: input, shape index: {}]   ;;  %s1195_s8 = inlined_call_operand.vmem [shape: f32[16,128], index: 8, kind: output, shape index: {}]  }
   0x1   :  { %v879_v0 = vld [vmem:[%s1187_s4 + $0x8] sm:$0xff]  ;;  %v878_v1 = vld [vmem:[%s1187_s4] sm:$0xff]  ;;  %s958_s17 = smov 112   ;;  %v887_v51 = vld [vmem:[%s1192_s2 + $0x38] sm:$0xff]  ;;  %s960_s9 = smov 24   ;;  %vm345_vm4 = vcmask 126016  }
   0x2   :  { %67 = vmatpush.bf16.msra.mxu0 %v879_v0  ;;  %v877_v2 = vld [vmem:[%s1189_s0] sm:$0xff]  ;;  %v764_v19 = vld [vmem:[%s1190_s1 + $0x8] sm:$0xf]  ;;  %v814_v21 = vld [vmem:[%s1190_s1 + $0xc] sm:$0xf]  ;;  %194 = vmatpush.bf16.msra.mxu2 %v887_v51  ;;  %s961_s10 = smov 16  }
   0x3   :  { %v80_v3 = vld [vmem:[%s1190_s1] sm:$0xf]  ;;  %v714_v5 = vld [vmem:[%s1190_s1 + $0x4] sm:$0xf]  ;;  %v356_v20 = vsel %vm93_vm1, %v764_v19, 0  ;;  %v491_v22 = vsel %vm93_vm1, %v814_v21, 0 }
   0x4   :  { %v95_v4 = vsel %vm93_vm1, %v80_v3, 0  ;;  %v221_v6 = vsel %vm93_vm1, %v714_v5, 0  ;;  %v921_v7 = vld [vmem:[%s1188_s5] ss:$0 sm:$0xff]  ;;  %v886_v52 = vld [vmem:[%s1192_s2 + $0x30] sm:$0xff]  ;;  %v885_v53 = vld [vmem:[%s1192_s2 + $0x28] sm:$0xff] }
   0x5   :  { %104 = vmatpush.bf16.msra.mxu1 %v95_v4  ;;  %230 = vmatpush.bf16.msra.mxu3 %v221_v6  ;;  %v922_v24 = vld [vmem:[%s1191_s3] ss:$0 sm:$0xff]  ;;  %v883_v58 = vld [vmem:[%s1192_s2 + $0x18] sm:$0xff]  ;;  %v882_v61 = vld [vmem:[%s1192_s2 + $0x10] sm:$0xff]  ;;  %vm480_vm5 = vcmask 191616   ;;  %vm615_vm6 = vcmask 257216  }
   0x6   :  { %68 = vmatpush.bf16.msra.mxu0 %v878_v1  ;;  %195 = vmatpush.bf16.msra.mxu2 %v886_v52  ;;  %v884_v55 = vld [vmem:[%s1192_s2 + $0x20] sm:$0xff]  ;;  %v881_v3 = vld [vmem:[%s1192_s2 + $0x8] sm:$0xff] }
   0x7   :  { %v880_v4 = vld [vmem:[%s1192_s2] sm:$0xff] }
   0x9   :  { %680 = vmatmul.msk.bf16.vlgmr.msra.gmra.mxu0 %vm57_vm0, %v877_v2  ;;  %365 = vmatpush.bf16.msrb.mxu3 %v356_v20 }
   0xa   :  { %196 = vmatpush.bf16.msra.mxu2 %v885_v53 }
   0xe   :  { %197 = vmatpush.bf16.msra.mxu2 %v884_v55 }
  0x12   :  { %198 = vmatpush.bf16.msra.mxu2 %v883_v58 }
  0x16   :  { %199 = vmatpush.bf16.msra.mxu2 %v882_v61 }
  0x1a   :  { %200 = vmatpush.bf16.msra.mxu2 %v881_v3 }
  0x1e   :  { %201 = vmatpush.bf16.msra.mxu2 %v880_v4 }
  0x86   :  { %v70_v8 = vpop.f32.mrf.mxu0 }
  0x87   :  { %v71_v9 = vadd.f32 %v921_v7, %v70_v8 }
  0x89   :  { %v75_v10 = vmul.f32 0.35355338, %v71_v9 }
  0x8b   :  { %v77_v13 = vpack.c.bf16 %v75_v10, %v75_v10  ;;  %v911_v10 = vld [vmem:[%s1192_s2 + $0xf8] sm:$0xff] }
  0x8c   :  { %591 = vmatpush.bf16.msrb.mxu2 %v911_v10 }
  0x8d   :  { %v86_v16 = vunpack.c.l.b16 %v77_v13 }
  0x8e   :  { %v72_v11 = vpop.f32.mrf.mxu0 }
  0x8f   :  { %v73_v12 = vadd.f32 %v921_v7, %v72_v11  ;;  %v895_v11 = vld [vmem:[%s1192_s2 + $0x78] sm:$0xff] }
  0x90   :  { %321 = vmatpush.bf16.msrb.mxu1 %v895_v11 }
  0x91   :  { %v76_v14 = vmul.f32 0.35355338, %v73_v12  ;;  %v910_v12 = vld [vmem:[%s1192_s2 + $0xf0] sm:$0xff] }
  0x92   :  { %592 = vmatpush.bf16.msrb.mxu2 %v910_v12 }
  0x93   :  { %v78_v15 = vpack.c.bf16 %v76_v14, %v76_v14 }
  0x95   :  { %v87_v17 = vunpack.c.l.b16 %v78_v15  ;;  %v909_v15 = vld [vmem:[%s1192_s2 + $0xe8] sm:$0xff] }
  0x96   :  { %593 = vmatpush.bf16.msrb.mxu2 %v909_v15 }
  0x97   :  { %v88_v18 = vpack.c.b16 %v87_v17, %v86_v16 }
  0x99   :  { %485 = vrot.lane.b32.xlu1 %v88_v18, %s956_s15  ;;  %215 = vrot.lane.b32.xlu0 %v88_v18, %s957_s16 }
  0x9a   :  { %681 = vmatmul.msk.bf16.vlgmr.msra.gmra.mxu1 %vm89_vm2, %v88_v18 }
  0xa1   :  { %350 = vrot.lane.b32.xlu0 %v88_v18, %s958_s17 }
 0x10b   :  { %v216_v23 = vpop.permute.xlu0 %215  ;;  %v486_v30 = vpop.permute.xlu1 %485 }
 0x10c   :  { %715 = vmatmul.msk.bf16.vlgmr.msra.gmra.mxu3 %vm89_vm2, %v216_v23 }
 0x10d   :  { %500 = vmatpush.bf16.msra.mxu3 %v491_v22 }
 0x113   :  { %v351_v27 = vpop.permute.xlu0 %350 }
 0x117   :  { %v106_v25 = vpop.f32.mrf.mxu1 }
 0x118   :  { %v107_v26 = vadd.f32 %v922_v24, %v106_v25 }
 0x11a   :  { %111 = vmax.xlane.f32.xlu1 %v107_v26 }
 0x11c   :  { %765 = vmatmul.msk.bf16.vlgmr.msrb.gmra.mxu3 %vm89_vm2, %v351_v27 }
 0x11f   :  { %v108_v28 = vpop.f32.mrf.mxu1 }
 0x120   :  { %v109_v29 = vadd.f32 %v922_v24, %v108_v28 }
 0x122   :  { %113 = vmax.xlane.f32.xlu2 %v109_v29 }
 0x12c   :  { %815 = vmatmul.msk.bf16.vlgmr.msra.gmra.mxu3 %vm89_vm2, %v486_v30  ;;  %v894_v30 = vld [vmem:[%s1192_s2 + $0x70] sm:$0xff] }
 0x12d   :  { %322 = vmatpush.bf16.msrb.mxu1 %v894_v30 }
 0x18d   :  { %v112_v45 = vpop.xlane.xlu1 %111 }
 0x18e   :  { %v115_v47 = vsub.f32 %v107_v26, %v112_v45  ;;  %v900_v45 = vld [vmem:[%s1192_s2 + $0xa0] sm:$0xff] }
 0x18f   :  { %v232_v31 = vpop.f32.mrf.mxu3 }
 0x190   :  { %v233_v42 = vadd.f32 %v922_v24, %v232_v31  ;;  %v117_v48 = vmul.f32 1.442695, %v115_v47  ;;  %v908_v31 = vld [vmem:[%s1192_s2 + $0xe0] sm:$0xff]  ;;  %v898_v47 = vld [vmem:[%s1192_s2 + $0x90] sm:$0xff] }
 0x191   :  { %594 = vmatpush.bf16.msrb.mxu2 %v908_v31 }
 0x195   :  { %v114_v32 = vpop.xlane.xlu2 %113 }
 0x196   :  { %v116_v33 = vsub.f32 %v109_v29, %v114_v32  ;;  %v893_v32 = vld [vmem:[%s1192_s2 + $0x68] sm:$0xff] }
 0x197   :  { %v234_v34 = vpop.f32.mrf.mxu3  ;;  %323 = vmatpush.bf16.msrb.mxu1 %v893_v32  ;;  %v923_v32 = vld [vmem:[%s1193_s7] ss:$0 sm:$0xff] }
 0x198   :  { %v119_v35 = vmul.f32 1.442695, %v116_v33  ;;  %v235_v44 = vadd.f32 %v922_v24, %v234_v34  ;;  %v907_v33 = vld [vmem:[%s1192_s2 + $0xd8] sm:$0xff]  ;;  %v892_v34 = vld [vmem:[%s1192_s2 + $0x60] sm:$0xff] }
 0x199   :  { %595 = vmatpush.bf16.msrb.mxu2 %v907_v33 }
 0x19a   :  { %924 = vpow2.f32 %v119_v35  ;;  %v906_v35 = vld [vmem:[%s1192_s2 + $0xd0] sm:$0xff] }
 0x19b   :  { %926 = vpow2.f32 %v117_v48  ;;  %324 = vmatpush.bf16.msrb.mxu1 %v892_v34  ;;  %v897_v48 = vld [vmem:[%s1192_s2 + $0x88] sm:$0xff] }
 0x19d   :  { %596 = vmatpush.bf16.msrb.mxu2 %v906_v35 }
 0x19f   :  { %v367_v36 = vpop.f32.mrf.mxu3 }
 0x1a0   :  { %v1043_v37 = vpop.eup %924  ;;  %v368_v46 = vadd.f32 %v922_v24, %v367_v36  ;;  %v891_v36 = vld [vmem:[%s1192_s2 + $0x58] sm:$0xff] }
 0x1a1   :  { %123 = vadd.xlane.f32.xlu1 %v1043_v37  ;;  %v1046_v50 = vpop.eup %926  ;;  %325 = vmatpush.bf16.msrb.mxu1 %v891_v36 }
 0x1a7   :  { %v369_v38 = vpop.f32.mrf.mxu3 }
 0x1a8   :  { %v370_v49 = vadd.f32 %v922_v24, %v369_v38  ;;  %v905_v38 = vld [vmem:[%s1192_s2 + $0xc8] sm:$0xff] }
 0x1a9   :  { %597 = vmatpush.bf16.msrb.mxu2 %v905_v38 }
 0x1af   :  { %v502_v39 = vpop.f32.mrf.mxu3 }
 0x1b0   :  { %v503_v40 = vadd.f32 %v922_v24, %v502_v39  ;;  %v890_v39 = vld [vmem:[%s1192_s2 + $0x50] sm:$0xff] }
 0x1b1   :  { %326 = vmatpush.bf16.msrb.mxu1 %v890_v39 }
 0x1b2   :  { %507 = vmax.xlane.f32.xlu2 %v503_v40 }
 0x1b7   :  { %v504_v41 = vpop.f32.mrf.mxu3 }
 0x1b8   :  { %v505_v43 = vadd.f32 %v922_v24, %v504_v41  ;;  %v904_v41 = vld [vmem:[%s1192_s2 + $0xc0] sm:$0xff] }
 0x1b9   :  { %598 = vmatpush.bf16.msrb.mxu2 %v904_v41 }
 0x1ba   :  { %509 = vmax.xlane.f32.xlu0 %v505_v43  ;;  %237 = vmax.xlane.f32.xlu2 %v233_v42 }
 0x1c2   :  { %239 = vmax.xlane.f32.xlu2 %v235_v44 }
 0x1ca   :  { %372 = vmax.xlane.f32.xlu2 %v368_v46 }
 0x1d2   :  { %374 = vmax.xlane.f32.xlu2 %v370_v49 }
 0x1da   :  { %121 = vadd.xlane.f32.xlu2 %v1046_v50 }
 0x214   :  { %v124_v22 = vpop.xlane.xlu1 %123 }
 0x225   :  { %v508_v54 = vpop.xlane.xlu2 %507 }
 0x226   :  { %v511_v56 = vsub.f32 %v503_v40, %v508_v54  ;;  %v902_v40 = vld [vmem:[%s1192_s2 + $0xb0] sm:$0xff] }
 0x228   :  { %v513_v57 = vmul.f32 1.442695, %v511_v56 }
 0x22a   :  { %928 = vpow2.f32 %v513_v57 }
 0x22d   :  { %v510_v59 = vpop.xlane.xlu0 %509  ;;  %v238_v60 = vpop.xlane.xlu2 %237 }
 0x22e   :  { %v512_v62 = vsub.f32 %v505_v43, %v510_v59  ;;  %v241_v63 = vsub.f32 %v233_v42, %v238_v60  ;;  %v889_v42 = vld [vmem:[%s1192_s2 + $0x48] sm:$0xff] }
 0x22f   :  { %v901_v43 = vld [vmem:[%s1192_s2 + $0xa8] sm:$0xff]  ;;  %327 = vmatpush.bf16.msrb.mxu1 %v889_v42 }
 0x230   :  { %v1067_v0 = vpop.eup %928  ;;  %v515_v1 = vmul.f32 1.442695, %v512_v62  ;;  %v243_v2 = vmul.f32 1.442695, %v241_v63 }
 0x231   :  { %517 = vadd.xlane.f32.xlu2 %v1067_v0 }
 0x232   :  { %930 = vpow2.f32 %v515_v1 }
 0x233   :  { %932 = vpow2.f32 %v243_v2 }
 0x235   :  { %v240_v5 = vpop.xlane.xlu2 %239 }
 0x236   :  { %v242_v6 = vsub.f32 %v235_v44, %v240_v5  ;;  %v888_v44 = vld [vmem:[%s1192_s2 + $0x40] sm:$0xff] }
 0x237   :  { %328 = vmatpush.bf16.msrb.mxu1 %v888_v44 }
 0x238   :  { %v1076_v7 = vpop.eup %930  ;;  %v245_v8 = vmul.f32 1.442695, %v242_v6 }
 0x239   :  { %v1078_v9 = vpop.eup %932  ;;  %519 = vadd.xlane.f32.xlu0 %v1076_v7 }
 0x23a   :  { %934 = vpow2.f32 %v245_v8  ;;  %247 = vadd.xlane.f32.xlu1 %v1078_v9 }
 0x23d   :  { %v373_v13 = vpop.xlane.xlu2 %372 }
 0x23e   :  { %v376_v14 = vsub.f32 %v368_v46, %v373_v13  ;;  %v899_v46 = vld [vmem:[%s1192_s2 + $0x98] sm:$0xff] }
 0x240   :  { %v1094_v16 = vpop.eup %934  ;;  %v378_v17 = vmul.f32 1.442695, %v376_v14 }
 0x241   :  { %249 = vadd.xlane.f32.xlu2 %v1094_v16 }
 0x242   :  { %936 = vpow2.f32 %v378_v17 }
 0x245   :  { %v375_v18 = vpop.xlane.xlu2 %374 }
 0x246   :  { %v377_v19 = vsub.f32 %v370_v49, %v375_v18 }
 0x248   :  { %v1097_v20 = vpop.eup %936  ;;  %v380_v21 = vmul.f32 1.442695, %v377_v19 }
 0x249   :  { %382 = vadd.xlane.f32.xlu0 %v1097_v20 }
 0x24a   :  { %938 = vpow2.f32 %v380_v21 }
 0x24b   :  { %940 = vrcp.f32 %v124_v22 }
 0x24d   :  { %v122_v23 = vpop.xlane.xlu2 %121 }
 0x24e   :  { %942 = vrcp.f32 %v122_v23 }
 0x250   :  { %v1100_v24 = vpop.eup %938 }
 0x251   :  { %384 = vadd.xlane.f32.xlu1 %v1100_v24  ;;  %v941_v25 = vpop.eup %940 }
 0x252   :  { %v128_v28 = vmul.f32 %v941_v25, %v1043_v37  ;;  %v903_v37 = vld [vmem:[%s1192_s2 + $0xb8] sm:$0xff]  ;;  %v913_v25 = vld [vmem:[%s1194_s6] sm:$0xff] }
 0x253   :  { %456 = vmatpush.bf16.msrb.mxu0 %v903_v37 }
 0x254   :  { %v943_v26 = vpop.eup %942 }
 0x255   :  { %v127_v27 = vmul.f32 %v943_v26, %v1046_v50  ;;  %v896_v50 = vld [vmem:[%s1192_s2 + $0x80] sm:$0xff]  ;;  %s959_s2 = smov 8  }
 0x257   :  { %v129_v29 = vpack.c.bf16 %v128_v28, %v127_v27  ;;  %457 = vmatpush.bf16.msrb.mxu0 %v902_v40 }
 0x259   :  { %202 = vmatmul.bf16.vlgmr.msra.gmra.mxu2 %v129_v29 }
 0x25b   :  { %458 = vmatpush.bf16.msrb.mxu0 %v901_v43 }
 0x25f   :  { %459 = vmatpush.bf16.msrb.mxu0 %v900_v45 }
 0x263   :  { %460 = vmatpush.bf16.msrb.mxu0 %v899_v46 }
 0x267   :  { %461 = vmatpush.bf16.msrb.mxu0 %v898_v47 }
 0x26b   :  { %462 = vmatpush.bf16.msrb.mxu0 %v897_v48 }
 0x26f   :  { %463 = vmatpush.bf16.msrb.mxu0 %v896_v50 }
 0x2a4   :  { %v518_v49 = vpop.xlane.xlu2 %517 }
 0x2a5   :  { %944 = vrcp.f32 %v518_v49 }
 0x2ab   :  { %v945_v53 = vpop.eup %944 }
 0x2ac   :  { %v520_v51 = vpop.xlane.xlu0 %519  ;;  %v523_v56 = vmul.f32 %v945_v53, %v1067_v0 }
 0x2ad   :  { %946 = vrcp.f32 %v520_v51  ;;  %v248_v52 = vpop.xlane.xlu1 %247 }
 0x2ae   :  { %948 = vrcp.f32 %v248_v52 }
 0x2b3   :  { %v947_v54 = vpop.eup %946 }
 0x2b4   :  { %v250_v55 = vpop.xlane.xlu2 %249  ;;  %v524_v57 = vmul.f32 %v947_v54, %v1076_v7  ;;  %v949_v59 = vpop.eup %948 }
 0x2b5   :  { %950 = vrcp.f32 %v250_v55  ;;  %v253_v61 = vmul.f32 %v949_v59, %v1078_v9 }
 0x2b6   :  { %v525_v58 = vpack.c.bf16 %v524_v57, %v523_v56 }
 0x2b8   :  { %599 = vmatmul.bf16.vlgmr.msrb.gmra.mxu2 %v525_v58 }
 0x2bb   :  { %v951_v60 = vpop.eup %950 }
 0x2bc   :  { %v254_v62 = vmul.f32 %v951_v60, %v1094_v16  ;;  %v383_v1 = vpop.xlane.xlu0 %382 }
 0x2bd   :  { %952 = vrcp.f32 %v383_v1 }
 0x2be   :  { %v255_v63 = vpack.c.bf16 %v254_v62, %v253_v61 }
 0x2c0   :  { %329 = vmatmul.bf16.vlgmr.msrb.gmra.mxu1 %v255_v63 }
 0x2c3   :  { %v953_v3 = vpop.eup %952 }
 0x2c4   :  { %v385_v2 = vpop.xlane.xlu1 %384  ;;  %v388_v0 = vmul.f32 %v953_v3, %v1097_v20 }
 0x2c5   :  { %954 = vrcp.f32 %v385_v2 }
 0x2cb   :  { %v955_v4 = vpop.eup %954 }
 0x2cc   :  { %v389_v5 = vmul.f32 %v955_v4, %v1100_v24  ;;  %v914_v24 = vld [vmem:[%s1194_s6 + $0x8] sm:$0xff] }
 0x2cd   :  { %654 = vmatpush.bf16.msra.mxu1 %v914_v24 }
 0x2ce   :  { %v390_v6 = vpack.c.bf16 %v389_v5, %v388_v0 }
 0x2d0   :  { %464 = vmatmul.bf16.vlgmr.msrb.gmra.mxu0 %v390_v6 }
 0x2d1   :  { %655 = vmatpush.bf16.msra.mxu1 %v913_v25 }
 0x2dc   :  { %v203_v7 = vpop.f32.mrf.mxu2 }
 0x2dd   :  { %v208_v8 = vpack.c.bf16 %v203_v7, %v203_v7 }
 0x2df   :  { %211 = vst.msk [vmem:[#allocation2] sm:$0xf] %vm210_vm3, %v208_v8 }
 0x2e4   :  { %v205_v9 = vpop.f32.mrf.mxu2 }
 0x2e5   :  { %v209_v10 = vpack.c.bf16 %v205_v9, %v205_v9 }
 0x2e7   :  { %212 = vst.msk [vmem:[#allocation2 + $0x4] sm:$0xf] %vm210_vm3, %v209_v10 }
 0x33b   :  { %v600_v13 = vpop.f32.mrf.mxu2 }
 0x33c   :  { %v605_v15 = vpack.c.bf16 %v600_v13, %v600_v13 }
 0x33d   :  { %v330_v11 = vpop.f32.mrf.mxu1 }
 0x33e   :  { %v335_v12 = vpack.c.bf16 %v330_v11, %v330_v11 }
 0x340   :  { %339 = vrot.lane.b32.xlu2 %v335_v12, %s959_s2 }
 0x343   :  { %v602_v19 = vpop.f32.mrf.mxu2 }
 0x344   :  { %v606_v21 = vpack.c.bf16 %v602_v19, %v602_v19 }
 0x345   :  { %v332_v14 = vpop.f32.mrf.mxu1 }
 0x346   :  { %v336_v16 = vpack.c.bf16 %v332_v14, %v332_v14 }
 0x348   :  { %609 = vrot.lane.b32.xlu2 %v605_v15, %s960_s9  ;;  %341 = vrot.lane.b32.xlu0 %v336_v16, %s959_s2 }
 0x34d   :  { %v465_v17 = vpop.f32.mrf.mxu0 }
 0x34e   :  { %v470_v18 = vpack.c.bf16 %v465_v17, %v465_v17 }
 0x350   :  { %474 = vrot.lane.b32.xlu1 %v470_v18, %s961_s10 }
 0x355   :  { %v467_v20 = vpop.f32.mrf.mxu0 }
 0x356   :  { %v471_v22 = vpack.c.bf16 %v467_v20, %v467_v20 }
 0x358   :  { %611 = vrot.lane.b32.xlu1 %v606_v21, %s960_s9  ;;  %476 = vrot.lane.b32.xlu0 %v471_v22, %s961_s10 }
 0x39a   :  { %v340_v23 = vpop.permute.xlu2 %339 }
 0x39b   :  { %346 = vst.msk [vmem:[#allocation2] sm:$0xf] %vm345_vm4, %v340_v23 }
 0x3a2   :  { %v610_v28 = vpop.permute.xlu2 %609 }
 0x3ba   :  { %v342_v26 = vpop.permute.xlu0 %341 }
 0x3bb   :  { %347 = vst.msk [vmem:[#allocation2 + $0x4] sm:$0xf] %vm345_vm4, %v342_v26 }
 0x3c2   :  { %v475_v27 = vpop.permute.xlu1 %474 }
 0x3c3   :  { %481 = vst.msk [vmem:[#allocation2] sm:$0xf] %vm480_vm5, %v475_v27 }
 0x3c4   :  { %616 = vst.msk [vmem:[#allocation2] sm:$0xf] %vm615_vm6, %v610_v28 }
 0x3ca   :  { %v612_v29 = vpop.permute.xlu1 %611  ;;  %v477_v30 = vpop.permute.xlu0 %476 }
 0x3cb   :  { %482 = vst.msk [vmem:[#allocation2 + $0x4] sm:$0xf] %vm480_vm5, %v477_v30 }
 0x3cc   :  { %617 = vst.msk [vmem:[#allocation2 + $0x4] sm:$0xf] %vm615_vm6, %v612_v29 }
 0x3d3   :  { %v912_v31 = vld [vmem:[#allocation2] sm:$0xff] }
 0x3d4   :  { %876 = vmatmul.msk.bf16.vlgmr.msra.gmra.mxu1 %vm57_vm0, %v912_v31 }
 0x451   :  { %v657_v33 = vpop.f32.mrf.mxu1 }
 0x452   :  { %v658_v34 = vadd.f32 %v923_v32, %v657_v33 }
 0x454   :  { %662 = vst [vmem:[%s1195_s8] sm:$0xff] %v658_v34 }
 0x459   :  { %v659_v35 = vpop.f32.mrf.mxu1 }
 0x45a   :  { %v660_v36 = vadd.f32 %v923_v32, %v659_v35 }
 0x45c   :  { %663 = vst [vmem:[%s1195_s8 + $0x8] sm:$0xff] %v660_v36 }

</bundles_post_ra>
